<compile_context>
chip_gen: v6e
topology: v6e:2x2x1
jax: 0.10.0
libtpu: 0.0.40
codegen_flags: <defaults>
</compile_context>

<pallas_src>
import jax
import jax.numpy as jnp
import numpy as np
from jax import lax
from jax.experimental import pallas as pl
from jax.experimental.pallas import tpu as pltpu


def _patch_embed_kernel(p_ref, w_ref, aux_ref, o_ref):
    # p_ref:   (1, K_pad, TM)      patches tile (lane dim = TM, 128-multiple -> dense)
    # w_ref:   (C_out_p, K_pad)    full weight matrix, resident across the grid
    # aux_ref: (C_out_p, 4)        columns: [conv bias, bn scale, bn shift, 0]
    # o_ref:   (1, C_out_p, TM)    output tile (lane dim = TM -> unmasked stores)
    acc = jnp.dot(w_ref[...], p_ref[0], preferred_element_type=jnp.float32)  # (C_out_p, TM)
    z = acc + aux_ref[:, 0:1]
    # exact erf-GELU, matching torch.nn.GELU(approximate='none')
    g = 0.5 * z * (1.0 + lax.erf(z * 0.7071067811865476))
    # fused eval-mode BatchNorm2d: per-channel scale/shift
    o_ref[0] = (g * aux_ref[:, 1:2] + aux_ref[:, 2:3]).astype(o_ref.dtype)


def _round_up(a, b):
    return (a + b - 1) // b * b


def _pick_tm(hw, tm_max, want_two_tiles):
    """Largest-reasonable 128-multiple tile minimizing padded columns + per-step overhead."""
    hw128 = _round_up(hw, 128)
    cap = max(128, min(_round_up(tm_max, 128), hw128))
    cands = list(range(128, cap + 1, 128))

    def cost(c):
        hw_pad = _round_up(hw, c)
        steps = hw_pad // c
        return hw_pad + 128 * steps  # padded cols + ~0.35us/step expressed in output columns

    def pick(cs):
        return min(cs, key=lambda c: (cost(c), -c))

    best = pick(cands)
    if want_two_tiles:
        multi = [c for c in cands if _round_up(hw, c) // c >= 2]
        if multi:
            best = pick(multi)  # keep both v7x TensorCores busy when N == 1
    return best


def convmixer_patch_embed(x, weight, bias, gamma, beta, run_mean, run_var,
                          *, kernel, stride, eps=1e-5, tm_max=1024,
                          compute_dtype=jnp.float32):
    """x: (N, C_in, H, W), weight: (C_out, C_in, k, k). Returns NCHW output in x.dtype."""
    assert kernel == stride, "ConvMixer patch embed assumes kernel == stride, padding == 0"
    N, C_in, H, W = x.shape
    C_out = weight.shape[0]
    out_dtype = x.dtype
    Ho = (H - kernel) // stride + 1
    Wo = (W - kernel) // stride + 1
    K = C_in * kernel * kernel
    HW = Ho * Wo

    # Alignment choices: lane dims must be 128-multiples (or full extent); sublane dims 8
    # (f32) / 16 (bf16).  K_pad / C_out_p are full-extent block dims so only need sublane
    # alignment -- no more 128-padding of K.
    itemsize = jnp.dtype(compute_dtype).itemsize
    k_align = 16 if itemsize < 4 else 8
    c_align = 16 if (itemsize < 4 or jnp.dtype(out_dtype).itemsize < 4) else 8
    K_pad = _round_up(K, k_align)
    C_out_p = _round_up(C_out, c_align)

    tm = _pick_tm(HW, tm_max, want_two_tiles=(N == 1))
    HW_pad = _round_up(HW, tm)

    # --- glue: cast FIRST (halves glue-pass bytes in bf16), then im2col (one XLA fusion) ---
    x = x.astype(compute_dtype)
    if Ho * stride != H or Wo * stride != W:
        x = x[:, :, :Ho * stride, :Wo * stride]  # drop rows/cols a strided conv never reads
    patches = x.reshape(N, C_in, Ho, kernel, Wo, kernel)
    patches = patches.transpose(0, 1, 3, 5, 2, 4).reshape(N, K, HW)
    patches = jnp.pad(patches, ((0, 0), (0, K_pad - K), (0, HW_pad - HW)))

    w_mat = weight.astype(compute_dtype).reshape(C_out, K)
    w_mat = jnp.pad(w_mat, ((0, C_out_p - C_out), (0, K_pad - K)))

    # Fold eval-mode BatchNorm into per-channel scale/shift; pack with bias into one aux array.
    inv_std = 1.0 / jnp.sqrt(run_var.astype(jnp.float32) + eps)
    scale = gamma.astype(jnp.float32) * inv_std
    shift = beta.astype(jnp.float32) - run_mean.astype(jnp.float32) * scale
    aux = jnp.stack([bias.astype(jnp.float32), scale, shift, jnp.zeros_like(scale)], axis=1)
    aux = jnp.pad(aux, ((0, C_out_p - C_out), (0, 0)))

    # VMEM budget from the actual footprint (double-buffered tiles, resident weight/aux).
    out_itemsize = jnp.dtype(out_dtype).itemsize
    vmem_bytes = (2 * K_pad * tm * itemsize            # patch tiles (double buffered)
                  + 2 * C_out_p * K_pad * itemsize     # weight (2 bufs allocated, fetched once)
                  + 2 * C_out_p * 128 * 4              # aux (lane-padded in VMEM)
                  + 2 * C_out_p * tm * out_itemsize)   # output tiles (double buffered)
    vmem_limit = int(min(max(2 * vmem_bytes, 8 << 20), 48 << 20))  # never the full v7x 64 MiB

    out = pl.pallas_call(
        _patch_embed_kernel,
        out_shape=jax.ShapeDtypeStruct((N, C_out_p, HW_pad), out_dtype),
        grid=(N, HW_pad // tm),
        in_specs=[
            pl.BlockSpec((1, K_pad, tm), lambda n, j: (n, 0, j)),   # patches tile
            pl.BlockSpec((C_out_p, K_pad), lambda n, j: (0, 0)),    # full weight, resident
            pl.BlockSpec((C_out_p, 4), lambda n, j: (0, 0)),        # packed bias/scale/shift
        ],
        out_specs=pl.BlockSpec((1, C_out_p, tm), lambda n, j: (n, 0, j)),
        compiler_params=pltpu.CompilerParams(
            dimension_semantics=("parallel", "parallel"),
            vmem_limit_bytes=vmem_limit),
    )(patches, w_mat, aux)

    # (N, C_out_p, HW_pad) -> NCHW; when C_out_p==C_out and HW_pad==HW the slice is a view.
    return out[:, :C_out, :HW].reshape(N, C_out, Ho, Wo)


if __name__ == "__main__":
    key = jax.random.PRNGKey(0)
    k_x, k_w, k_b, k_g, k_be, k_m, k_v = jax.random.split(key, 7)

    # small shapes consistent with the module: patch-embed a 16x16, 3-channel image
    N, C_in, H, W = 2, 3, 16, 16
    C_out, kernel, stride = 32, 4, 4

    x = jax.random.normal(k_x, (N, C_in, H, W), jnp.float32)
    weight = 0.1 * jax.random.normal(k_w, (C_out, C_in, kernel, kernel), jnp.float32)
    bias = 0.1 * jax.random.normal(k_b, (C_out,), jnp.float32)
    gamma = 1.0 + 0.1 * jax.random.normal(k_g, (C_out,), jnp.float32)
    beta = 0.1 * jax.random.normal(k_be, (C_out,), jnp.float32)
    run_mean = 0.1 * jax.random.normal(k_m, (C_out,), jnp.float32)
    run_var = jnp.abs(1.0 + 0.1 * jax.random.normal(k_v, (C_out,), jnp.float32))

    # pure-JAX reference (conv -> bias -> exact GELU -> eval-mode BatchNorm)
    conv = lax.conv_general_dilated(x, weight, (stride, stride), "VALID",
                                    dimension_numbers=("NCHW", "OIHW", "NCHW"))
    conv = conv + bias.reshape(1, C_out, 1, 1)
    act = jax.nn.gelu(conv, approximate=False)
    ref = ((act - run_mean.reshape(1, C_out, 1, 1))
           / jnp.sqrt(run_var.reshape(1, C_out, 1, 1) + 1e-5)
           * gamma.reshape(1, C_out, 1, 1) + beta.reshape(1, C_out, 1, 1))

    # f32 compute path (default, exact parity with torch semantics)
    y32 = convmixer_patch_embed(x, weight, bias, gamma, beta, run_mean, run_var,
                                kernel=kernel, stride=stride, compute_dtype=jnp.float32)
    y32 = jax.block_until_ready(y32)
    np.testing.assert_allclose(np.asarray(y32), np.asarray(ref), rtol=1e-4, atol=1e-4)

    # bf16 compute path (halved input-side HBM bytes, bf16 MXU rate), f32 accumulation/epilogue
    y16 = convmixer_patch_embed(x, weight, bias, gamma, beta, run_mean, run_var,
                                kernel=kernel, stride=stride, compute_dtype=jnp.bfloat16)
    y16 = jax.block_until_ready(y16)
    np.testing.assert_allclose(np.asarray(y16), np.asarray(ref), rtol=3e-2, atol=3e-2)

    print("KERNEL_OK")
</pallas_src>

<mosaic_0001>
module attributes {stable_mosaic.version = 11 : i64} {
  func.func @_patch_embed_kernel(%arg0: i32, %arg1: i32, %arg2: memref<1x48x128xf32, #tpu.memory_space<vmem>>, %arg3: memref<32x48xf32, #tpu.memory_space<vmem>>, %arg4: memref<32x4xf32, #tpu.memory_space<vmem>>, %arg5: memref<1x32x128xf32, #tpu.memory_space<vmem>>) attributes {dimension_semantics = [#tpu.dimension_semantics<parallel>, #tpu.dimension_semantics<parallel>], iteration_bounds = array<i64: 2, 1>, scalar_prefetch = 0 : i64, scratch_operands = 0 : i64, tpu.core_type = #tpu.core_type<tc>, window_params = [{transform_indices = @transform_0, window_bounds = array<i64: 1, 48, 128>}, {pipeline_mode = #tpu.pipeline_mode<synchronous>, transform_indices = @transform_1, window_bounds = array<i64: 32, 48>}, {pipeline_mode = #tpu.pipeline_mode<synchronous>, transform_indices = @transform_2, window_bounds = array<i64: 32, 4>}, {transform_indices = @transform_3, window_bounds = array<i64: 1, 32, 128>}]} {
    %c0 = arith.constant 0 : index
    %c0_0 = arith.constant 0 : index
    %0 = vector.load %arg3[%c0, %c0_0] : memref<32x48xf32, #tpu.memory_space<vmem>>, vector<32x48xf32>
    %c0_1 = arith.constant 0 : index
    %c0_2 = arith.constant 0 : index
    %c0_3 = arith.constant 0 : index
    %1 = vector.load %arg2[%c0_1, %c0_2, %c0_3] : memref<1x48x128xf32, #tpu.memory_space<vmem>>, vector<1x48x128xf32>
    %2 = vector.shape_cast %1 : vector<1x48x128xf32> to vector<48x128xf32>
    %cst = arith.constant dense<0.000000e+00> : vector<32x128xf32>
    %3 = tpu.matmul %0, %2, %cst {dimension_numbers = #tpu.dot_dimension_numbers<[1], [0], [0], [1], [0, 0, 1, 1], [], []>} : vector<32x48xf32>, vector<48x128xf32>, vector<32x128xf32> -> vector<32x128xf32>
    %c0_4 = arith.constant 0 : index
    %c0_5 = arith.constant 0 : index
    %4 = vector.load %arg4[%c0_4, %c0_5] : memref<32x4xf32, #tpu.memory_space<vmem>>, vector<32x1xf32>
    %5 = vector.broadcast %4 : vector<32x1xf32> to vector<32x128xf32>
    %6 = arith.addf %3, %5 : vector<32x128xf32>
    %cst_6 = arith.constant 5.000000e-01 : f32
    %7 = vector.broadcast %cst_6 : f32 to vector<32x128xf32>
    %8 = arith.mulf %7, %6 : vector<32x128xf32>
    %cst_7 = arith.constant 0.707106769 : f32
    %9 = vector.broadcast %cst_7 : f32 to vector<32x128xf32>
    %10 = arith.mulf %6, %9 : vector<32x128xf32>
    %11 = math.erf %10 : vector<32x128xf32>
    %cst_8 = arith.constant 1.000000e+00 : f32
    %12 = vector.broadcast %cst_8 : f32 to vector<32x128xf32>
    %13 = arith.addf %12, %11 : vector<32x128xf32>
    %14 = arith.mulf %8, %13 : vector<32x128xf32>
    %c0_9 = arith.constant 0 : index
    %c1 = arith.constant 1 : index
    %15 = vector.load %arg4[%c0_9, %c1] : memref<32x4xf32, #tpu.memory_space<vmem>>, vector<32x1xf32>
    %16 = vector.broadcast %15 : vector<32x1xf32> to vector<32x128xf32>
    %17 = arith.mulf %14, %16 : vector<32x128xf32>
    %c0_10 = arith.constant 0 : index
    %c2 = arith.constant 2 : index
    %18 = vector.load %arg4[%c0_10, %c2] : memref<32x4xf32, #tpu.memory_space<vmem>>, vector<32x1xf32>
    %19 = vector.broadcast %18 : vector<32x1xf32> to vector<32x128xf32>
    %20 = arith.addf %17, %19 : vector<32x128xf32>
    %c0_11 = arith.constant 0 : index
    %c0_12 = arith.constant 0 : index
    %c0_13 = arith.constant 0 : index
    %21 = vector.load %arg5[%c0_11, %c0_12, %c0_13] : memref<1x32x128xf32, #tpu.memory_space<vmem>>, vector<1x32x128xf32>
    %22 = vector.shape_cast %21 : vector<1x32x128xf32> to vector<32x128xf32>
    %23 = vector.shape_cast %20 : vector<32x128xf32> to vector<1x32x128xf32>
    tpu.vector_store %arg5[%c0_11, %c0_12, %c0_13], %23 {strides = array<i32>} : memref<1x32x128xf32, #tpu.memory_space<vmem>>, vector<1x32x128xf32>,
    return
  }
  func.func @transform_0(%arg0: i32, %arg1: i32) -> (i32, i32, i32) {
    %c0_i32 = arith.constant 0 : i32
    %c0_i32_0 = arith.constant 0 : i32
    return %arg0, %c0_i32, %arg1 : i32, i32, i32
  }
  func.func @transform_1(%arg0: i32, %arg1: i32) -> (i32, i32) {
    %c0_i32 = arith.constant 0 : i32
    %c0_i32_0 = arith.constant 0 : i32
    %c0_i32_1 = arith.constant 0 : i32
    return %c0_i32, %c0_i32_0 : i32, i32
  }
  func.func @transform_2(%arg0: i32, %arg1: i32) -> (i32, i32) {
    %c0_i32 = arith.constant 0 : i32
    %c0_i32_0 = arith.constant 0 : i32
    %c0_i32_1 = arith.constant 0 : i32
    return %c0_i32, %c0_i32_0 : i32, i32
  }
  func.func @transform_3(%arg0: i32, %arg1: i32) -> (i32, i32, i32) {
    %c0_i32 = arith.constant 0 : i32
    %c0_i32_0 = arith.constant 0 : i32
    return %arg0, %c0_i32, %arg1 : i32, i32, i32
  }
}

</mosaic_0001>

<bundles_post_ra>
// kernel: tpu_custom_call.1
= control target key start
LH: loop header
LB: loop body
LE: loop exit
PB: predicated region body
PF: predicated region fallthrough
CT: control target
= control target key end

     0   :  { %8 = vsyncpa [#allocation3], 0  ;;  %s955_s0 = inlined_call_operand.hbm [shape: f32[2,48,128], index: 0, kind: input, shape index: {}]   ;;  %s956_s1 = inlined_call_operand.vmem [shape: f32[32,48], index: 1, kind: input, shape index: {}]   ;;  %s957_s2 = inlined_call_operand.vmem [shape: f32[32,4], index: 2, kind: input, shape index: {}]   ;;  %s958_s3 = inlined_call_operand.hbm [shape: f32[2,32,128], index: 3, kind: output, shape index: {}]  }
   0x1   :  { %10 = vsyncpa [#allocation3 + $0x1], 0 }
   0x2   :  { %11 = vsyncpa [#allocation4], 0 }
   0x3   :  { %13 = vsyncpa [#allocation4 + $0x1], 0  ;;  %s784_s12 = smov 0   ;;  %s786_s13 = smov 0  }
   0x4   :  { %s788_s14 = smov 0   ;;  %s790_s15 = smov 0  }
   0x5   :  { %s792_s16 = smov 0   ;;  %s794_s17 = smov 0  }
   0x6 LB: > { %s502_s18 = sadd.s32 4294967295, %s753_s17   ;;  %s503_s19 = sadd.s32 4294967294, %s753_s17   ;;  %s753_s17 = sphi %s794_s17, %s19_s17   ;;  %s749_s16 = sphi %s792_s16, %s969_s16   ;;  %s745_s15 = sphi %s790_s15, %s968_s15   ;;  %s741_s14 = sphi %s788_s14, %s967_s14   ;;  %s737_s13 = sphi %s786_s13, %s966_s13   ;;  %s733_s12 = sphi %s784_s12, %s965_s12  }
   0x7   : > { %s31_s20 = sadd.s32 1, %s749_s16  ;;  %s40_s21 = sadd.s32 1, %s741_s14 }
   0x8   : > { %p33_p0 = scmp.ge.s32.totalorder %s31_s20, 2  ;;  %p47_p1 = scmp.ne.s32.totalorder %s741_s14, %s737_s13 }
   0x9   : > { %p48_p2 = scmp.eq.s32.totalorder %s753_s17, 0  ;;  %p53_p3 = scmp.ne.s32.totalorder %s737_s13, %s733_s12 }
   0xa   : > { %s971_s20 = smov (%p33_p0, %s31_s20), 0  ;;  %p54_p5 = scmp.eq.s32.totalorder %s502_s18, 0 }
   0xb   : > { %p825_p4 = por %p48_p2, %p47_p1  ;;  %s35_s23 = ssub.s32 %s749_s16, %s971_s20 }
   0xc   : > { %p121_p6 = scmp.eq.s32.totalorder %s502_s18, 1  ;;  %p38_p7 = scmp.eq.s32.totalorder %s35_s23, 0 }
   0xd   : > { %p831_p8 = por %p54_p5, %p53_p3  ;;  %p127_p10 = scmp.eq.s32.totalorder %s503_s19, 1 }
   0xe   : > { %p835_p9 = por %p121_p6, %p47_p1  ;;  %p574_p13 = scmp.lt.s32.totalorder %s753_s17, 2 }
   0xf   : > { %s840_s26 = scalar_select %p38_p7, %s741_s14, %s40_s21  }
  0x10   : > { %p842_p11 = por %p127_p10, %p53_p3  ;;  %s153_s28 = sand.u32 1, %s741_s14  }
  0x11   : > { %s559_s29 = smul.u32 48, %s153_s28  ;;  %p852_p0 = pnand %p574_p13, %p825_p4 }
  0x12   : > { %s560_s30 = smul.u32 768, %s749_s16  ;;  %p507_p1 = scmp.ge.s32.totalorder %s753_s17, 1 }
  0x13   : > { %s157_s8 = scalar_lea.vmem [#allocation2], %s559_s29  ;;  %s154_s10 = scalar_lea.sflag [#allocation3], %s153_s28 }
  0x14   : > { %s164_s7 = scalar_lea.hbm %s955_s0, %s560_s30  ;;  %s165_s9 = sshll.u32 %s157_s8, 4  ;;  %s166_s9 = int_to_ptr.vmem [resolvable:$true] %s165_s9 }
  0x15   : > { %p647_p2 = pneg %p852_p0  ;;  %s658_s11 = scalar_lea.vmem %s166_s9, 768 }
  0x16   : > { %p659_p3 = scmp.ne.s32.totalorder %s166_s9, %s658_s11  ;;  %s755_s18 = smov [#allocation2]  }
  0x17   : > { %s663_s19 = sshll.u32 %s755_s18, 4  ;;  %s664_s19 = int_to_ptr.vmem [resolvable:$false] %s663_s19 }
  0x18   : > { %p661_p5 = pnand %p659_p3, %p647_p2  ;;  %s665_s21 = scalar_lea.vmem %s664_s19, 1536 }
  0x19   : > { %p666_p4 = scmp.lt.s32.totalorder %s166_s9, %s664_s19  ;;  %p667_p7 = scmp.lt.s32.totalorder %s665_s21, %s658_s11 }
  0x1a   : > { %p662_p6 = pneg %p661_p5 }
  0x1b   : > { %p668_p10 = por %p667_p7, %p666_p4 }
  0x1d   : > { %p669_p13 = pnand %p668_p10, %p662_p6 }
  0x1f   : > { %672 = shalt.err (!%p669_p13)
}
  0x20   : > { %s756_s22 = smov 128   ;;  %s757_s23 = smov 8  }
  0x21   : > { %569 = dma.hbm_to_vmem [thread:$0]  (!%p852_p0), %s164_s7, 768, %s166_s9, %s154_s10, %s756_s22, %s756_s22, %s757_s23  }
  0x22   : > { %p173_p12 = scmp.lt.s32.totalorder %s753_s17, 3 }
  0x24   : > { %p174_p2 = pnand %p507_p1, %p173_p12 }
  0x25   : > { %s868_s28 = sand.u32 (!%p174_p2), 1, %s737_s13  }
  0x26   : > { %177 = sbr.rel (%p174_p2) target bundleno = 295 (0x127), region = 32  ;;  %s180_s30 = scalar_lea.sflag (!%p174_p2), [#allocation3], %s868_s28 }
  0x27   : > { %s561_s29 = smul.u32 (!%p174_p2), 48, %s868_s28 }
  0x29   : > { %s183_s5 = scalar_lea.vmem (!%p174_p2), [#allocation2], %s561_s29 }
  0x2b   : > { %724 = dma.done.wait (%p831_p8), %s180_s30, 768  }
  0x2c   : > { %726 = vsyncadd (%p831_p8), %s180_s30, 4294966528  ;;  %v758_v0 = vmov 0   ;;  %v215_v1 = vld [vmem:[%s183_s5 + $0x28] sm:$0xff]  ;;  %v214_v2 = vld [vmem:[%s183_s5 + $0x20] sm:$0xff]  ;;  %vm240_vm0 = vcmask 392192   ;;  %v759_v15 = vmov 1  }
  0x2d   : > { %632 = vset.pattern.permute.xlu1 %v758_v0  ;;  %631 = vset.pattern.permute.xlu0 %v758_v0  ;;  %v213_v3 = vld [vmem:[%s183_s5 + $0x18] sm:$0xff]  ;;  %v212_v4 = vld [vmem:[%s183_s5 + $0x10] sm:$0xff]  ;;  %v211_v5 = vld [vmem:[%s183_s5 + $0x8] sm:$0xff]  ;;  %v760_v16 = vmov 2   ;;  %s508_s24 = sshll.u32 %s868_s28, 5  ;;  %s518_s7 = sshll.u32 %s745_s15, 9 }
  0x2e   : > { %529 = vmatprep.subr.mxu0 %v215_v1  ;;  %547 = vmatprep.subr.mxu1 %v215_v1  ;;  %v210_v6 = vld [vmem:[%s183_s5] sm:$0xff]  ;;  %v207_v9 = vld [vmem:[%s956_s1 + $0x8] sm:$0xff]  ;;  %v209_v10 = vld [vmem:[%s956_s1 + $0x18] sm:$0xff]  ;;  %s205_s4 = scalar_lea.vmem [#allocation5], %s508_s24  ;;  %s907_s10 = scalar_lea.hbm %s958_s3, %s518_s7 }
  0x2f   : > { %530 = vmatpush3.msra.mxu0 %v215_v1  ;;  %553 = vmatpush3.msra.mxu1 %v215_v1  ;;  %v206_v7 = vld [vmem:[%s956_s1] sm:$0xff]  ;;  %v208_v8 = vld [vmem:[%s956_s1 + $0x10] sm:$0xff]  ;;  %v219_v13 = vld [vmem:[%s957_s2 + $0x18] sm:$0xff]  ;;  %s417_s6 = sshll.u32 %s205_s4, 4  ;;  %s403_s15 = scalar_lea.sflag [#allocation4], %s868_s28  ;;  %s902_s6 = int_to_ptr.vmem [resolvable:$true] %s417_s6 }
  0x30   : > { %531 = vmatprep.subr.mxu0 %v214_v2  ;;  %548 = vmatprep.subr.mxu1 %v214_v2  ;;  %v218_v11 = vld [vmem:[%s957_s2 + $0x10] sm:$0xff]  ;;  %v216_v12 = vld [vmem:[%s957_s2] sm:$0xff]  ;;  %v217_v14 = vld [vmem:[%s957_s2 + $0x8] sm:$0xff]  ;;  %s673_s11 = scalar_lea.vmem %s902_s6, 512  ;;  %s761_s18 = smov [#allocation5]  }
  0x31   : > { %532 = vmatpush3.msra.mxu0 %v214_v2  ;;  %554 = vmatpush3.msra.mxu1 %v214_v2  ;;  %p674_p8 = scmp.ne.s32.totalorder %s902_s6, %s673_s11  ;;  %s677_s19 = sshll.u32 %s761_s18, 4  ;;  %s678_s19 = int_to_ptr.vmem [resolvable:$false] %s677_s19 }
  0x32   : > { %533 = vmatprep.subr.mxu0 %v213_v3  ;;  %549 = vmatprep.subr.mxu1 %v213_v3  ;;  %s679_s21 = scalar_lea.vmem %s678_s19, 1024  ;;  %p680_p1 = scmp.lt.s32.totalorder %s902_s6, %s678_s19 }
  0x33   : > { %534 = vmatpush3.msra.mxu0 %v213_v3  ;;  %555 = vmatpush3.msra.mxu1 %v213_v3  ;;  %p675_p12 = pnand %p674_p8, %p835_p9  ;;  %p681_p3 = scmp.lt.s32.totalorder %s679_s21, %s673_s11 }
  0x34   : > { %535 = vmatprep.subr.mxu0 %v212_v4  ;;  %550 = vmatprep.subr.mxu1 %v212_v4 }
  0x35   : > { %536 = vmatpush3.msra.mxu0 %v212_v4  ;;  %556 = vmatpush3.msra.mxu1 %v212_v4  ;;  %p676_p0 = pneg %p675_p12  ;;  %p682_p5 = por %p681_p3, %p680_p1 }
  0x36   : > { %537 = vmatprep.subr.mxu0 %v211_v5  ;;  %551 = vmatprep.subr.mxu1 %v211_v5 }
  0x37   : > { %538 = vmatpush3.msra.mxu0 %v211_v5  ;;  %557 = vmatpush3.msra.mxu1 %v211_v5  ;;  %p683_p6 = pnand %p682_p5, %p676_p0 }
  0x38   : > { %539 = vmatprep.subr.mxu0 %v210_v6  ;;  %552 = vmatprep.subr.mxu1 %v210_v6 }
  0x39   : > { %540 = vmatpush3.msra.mxu0 %v210_v6  ;;  %558 = vmatpush3.msra.mxu1 %v210_v6 }
  0x3a   : > { %541 = vmatprep.mubr.msk.f32.mxu0 %vm240_vm0, %v206_v7  ;;  %544 = vmatprep.mubr.msk.f32.mxu1 %vm240_vm0, %v208_v8 }
  0x3b   : > { %542 = vmatmul.mubr.msk.f32.vlgmr.msra.gmra.mxu0 %vm240_vm0, %v207_v9  ;;  %545 = vmatmul.mubr.msk.f32.vlgmr.msra.gmra.mxu1 %vm240_vm0, %v209_v10 }
  0x3c   : > { %232 = vperm.xlu1 %632, %v218_v11   ;;  %222 = vperm.xlu0 %631, %v216_v12  }
  0x40   : > { %237 = vperm.xlu1 %632, %v219_v13   ;;  %227 = vperm.xlu0 %631, %v217_v14  }
  0x44   : > { %634 = vset.pattern.permute.xlu1 %v759_v15  ;;  %633 = vset.pattern.permute.xlu0 %v759_v15 }
  0x45   : > { %363 = vperm.xlu1 %634, %v217_v14   ;;  %359 = vperm.xlu0 %633, %v216_v12  }
  0x49   : > { %367 = vperm.xlu1 %634, %v218_v11   ;;  %371 = vperm.xlu0 %633, %v219_v13  }
  0x4d   : > { %635 = vset.pattern.permute.xlu1 %v760_v16  ;;  %636 = vset.pattern.permute.xlu0 %v760_v16 }
  0x4e   : > { %379 = vperm.xlu1 %635, %v216_v12   ;;  %383 = vperm.xlu0 %636, %v217_v14  }
  0x52   : > { %387 = vperm.xlu1 %635, %v218_v11  }
  0x56   : > { %391 = vperm.xlu1 %635, %v219_v13  }
  0xb7   : > { %v233_v17 = vpop.permute.xlu1 %232  ;;  %v223_v18 = vpop.permute.xlu0 %222 }
  0xbb   : > { %v238_v19 = vpop.permute.xlu1 %237  ;;  %v228_v20 = vpop.permute.xlu0 %227 }
  0xc0   : > { %v364_v25 = vpop.permute.xlu1 %363  ;;  %v360_v35 = vpop.permute.xlu0 %359 }
  0xc4   : > { %v368_v34 = vpop.permute.xlu1 %367  ;;  %v372_v38 = vpop.permute.xlu0 %371 }
  0xc9   : > { %v380_v36 = vpop.permute.xlu1 %379  ;;  %v384_v51 = vpop.permute.xlu0 %383 }
  0xcd   : > { %v388_v42 = vpop.permute.xlu1 %387 }
  0xd1   : > { %v392_v58 = vpop.permute.xlu1 %391 }
  0xfb   : > { %v543_v21 = vpop.f32.mrf.mxu0  ;;  %v546_v22 = vpop.f32.mrf.mxu1 }
  0xfc   : > { %v325_v23 = vadd.f32 %v543_v21, %v228_v20  ;;  %v335_v24 = vadd.f32 %v546_v22, %v238_v19 }
  0xfd   : > { %v319_v26 = vpop.f32.mrf.mxu0  ;;  %v329_v27 = vpop.f32.mrf.mxu1 }
  0xfe   : > { %v343_v28 = vmul.f32 0.70710677, %v325_v23  ;;  %v345_v29 = vmul.f32 0.70710677, %v335_v24  ;;  %v320_v30 = vadd.f32 %v319_v26, %v223_v18  ;;  %v330_v31 = vadd.f32 %v329_v27, %v233_v17 }
  0xff   : > { %v339_v40 = vmul.f32 0.5, %v325_v23  ;;  %v341_v43 = vmul.f32 0.5, %v335_v24 }
 0x100   : > { %637 = verf.f32 %v343_v28  ;;  %v342_v32 = vmul.f32 0.70710677, %v320_v30  ;;  %v344_v33 = vmul.f32 0.70710677, %v330_v31  ;;  %v338_v48 = vmul.f32 0.5, %v320_v30 }
 0x101   : > { %639 = verf.f32 %v345_v29  ;;  %v340_v53 = vmul.f32 0.5, %v330_v31 }
 0x102   : > { %641 = verf.f32 %v342_v32 }
 0x103   : > { %643 = verf.f32 %v344_v33 }
 0x10d   : > { %v638_v37 = vpop.eup %637 }
 0x10e   : > { %v640_v39 = vpop.eup %639  ;;  %v351_v41 = vadd.f32 1.0, %v638_v37 }
 0x10f   : > { %v353_v44 = vadd.f32 1.0, %v640_v39  ;;  %v642_v45 = vpop.eup %641 }
 0x110   : > { %v355_v46 = vmul.f32 %v351_v41, %v339_v40  ;;  %v644_v47 = vpop.eup %643  ;;  %v350_v49 = vadd.f32 1.0, %v642_v45 }
 0x111   : > { %v357_v50 = vmul.f32 %v353_v44, %v341_v43  ;;  %v352_v54 = vadd.f32 1.0, %v644_v47 }
 0x112   : > { %v375_v52 = vmul.f32 %v364_v25, %v355_v46  ;;  %v354_v55 = vmul.f32 %v350_v49, %v338_v48 }
 0x113   : > { %v377_v56 = vmul.f32 %v372_v38, %v357_v50  ;;  %v356_v57 = vmul.f32 %v352_v54, %v340_v53 }
 0x114   : > { %v395_v59 = vadd.f32 %v384_v51, %v375_v52  ;;  %v374_v60 = vmul.f32 %v360_v35, %v354_v55 }
 0x115   : > { %v397_v61 = vadd.f32 %v392_v58, %v377_v56  ;;  %v376_v62 = vmul.f32 %v368_v34, %v356_v57 }
 0x116   : > { %399 = vst [vmem:[%s205_s4 + $0x8] sm:$0xff] %v395_v59  ;;  %v394_v63 = vadd.f32 %v380_v36, %v374_v60 }
 0x117   : > { %401 = vst [vmem:[%s205_s4 + $0x18] sm:$0xff] %v397_v61  ;;  %v396_v0 = vadd.f32 %v388_v42, %v376_v62 }
 0x118   : > { %398 = vst [vmem:[%s205_s4] sm:$0xff] %v394_v63 }
 0x119   : > { %400 = vst [vmem:[%s205_s4 + $0x10] sm:$0xff] %v396_v0 }
 0x11a   : > { %686 = shalt.err (!%p683_p6)
}
 0x11b   : > { %s687_s22 = scalar_lea.hbm %s907_s10, 512  ;;  %s691_s30 = scalar_lea.hbm %s958_s3, 1024 }
 0x11c   : > { %p688_p4 = scmp.ne.s32.totalorder %s907_s10, %s687_s22  ;;  %p692_p13 = scmp.lt.s32.totalorder %s907_s10, %s958_s3 }
 0x11d   : > { %p693_p2 = scmp.lt.s32.totalorder %s691_s30, %s687_s22 }
 0x11e   : > { %p689_p7 = pnand %p688_p4, %p835_p9 }
 0x11f   : > { %p694_p8 = por %p693_p2, %p692_p13 }
 0x120   : > { %p690_p10 = pneg %p689_p7 }
 0x122   : > { %p695_p12 = pnand %p694_p8, %p690_p10 }
 0x124   : > { %698 = shalt.err (!%p695_p12)
}
 0x125   : > { %s762_s4 = smov 128   ;;  %s763_s7 = smov 8  }
 0x126   : > { %564 = dma.vmem_to_hbm [thread:$0]  (%p835_p9), %s902_s6, 512, %s907_s10, %s403_s15, %s762_s4, %s762_s4, %s763_s7  }
 0x127 PF: > { %s432_s8 = sand.u32 1, %s733_s12   ;;  %p964_p0 = scmp.ge.s32.totalorder %s753_s17, 2 }
 0x128   : > { %s433_s9 = scalar_lea.sflag [#allocation4], %s432_s8 }
 0x129   : > { %p571_p1 = pnand %p964_p0, %p842_p11 }
 0x12b   : > { %p572_p3 = pneg %p571_p1 }
 0x12d   : > { %728 = dma.done.wait (%p572_p3), %s433_s9, 512  }
 0x12e   : > { %730 = vsyncadd (%p572_p3), %s433_s9, 4294966784  ;;  %s19_s17 = sadd.s32 1, %s753_s17   ;;  %s965_s12 = smov %s737_s13 }
 0x12f   : > { %p16_p5 = scmp.ge.s32.totalorder %s19_s17, 4   ;;  %s966_s13 = smov %s741_s14 }
 0x130   : > { %s967_s14 = smov %s840_s26  ;;  %s968_s15 = smov %s749_s16 }
 0x131   : > { %s969_s16 = smov %s971_s20  ;;  %18 = sbr.rel (!%p16_p5) target bundleno = 6 (0x6), region = 77 }
 0x136   :  { %438 = vsyncpa [#allocation3], 1 }
 0x137   :  { %440 = vsyncpa [#allocation3 + $0x1], 1 }
 0x138   :  { %441 = vsyncpa [#allocation4], 1 }
 0x139   :  { %443 = vsyncpa [#allocation4 + $0x1], 1 }

</bundles_post_ra>
